<compile_context>
chip_gen: v7x
topology: tpu7x:2x2x1
jax: 0.10.0
libtpu: 0.0.40
codegen_flags: <defaults>
</compile_context>

<pallas_src>
import jax
import jax.numpy as jnp
from jax.experimental import pallas as pl
from jax.experimental.pallas import tpu as pltpu


def _mean_pool_kernel(hid_ref, mask_ref, out_ref, msum_ref):
    """Masked mean over the sequence axis, tiled over (batch, H, S).

    hid_ref : (TB, TS, TH)  activation tile (float32 or bfloat16)
    mask_ref: (TB, 1, TS)   attention-mask tile (float32, lanes dense)
    out_ref : (TB, TH)      pooled output / f32 accumulator (resident over S)
    msum_ref: (TB, 1)       f32 scratch accumulating the valid-token count
    """
    s_idx = pl.program_id(2)

    @pl.when(s_idx == 0)
    def _():
        out_ref[...] = jnp.zeros_like(out_ref)
        msum_ref[...] = jnp.zeros_like(msum_ref)

    h = hid_ref[...].astype(jnp.float32)                  # (TB, TS, TH)
    m = mask_ref[...]                                     # (TB, 1, TS) f32
    mw = m.reshape(m.shape[0], m.shape[2], 1)             # (TB, TS, 1)

    # Masked partial sum over this sequence tile (VPU, f32 accumulation).
    out_ref[...] += jnp.sum(h * mw, axis=1)               # (TB, TH)
    msum_ref[...] += jnp.sum(m, axis=-1)                  # (TB, 1)

    @pl.when(s_idx == pl.num_programs(2) - 1)
    def _():
        denom = jnp.maximum(msum_ref[...], 1e-9)          # clamp(min=1e-9)
        inv = pl.reciprocal(denom, approx=True)           # EUP, per-row
        out_ref[...] = out_ref[...] * inv                 # broadcast multiply


def _pick_tile(full, target, align):
    """Largest multiple of `align` dividing `full` that is <= target.

    Falls back to `full` (always a legal block dim) if `full` <= target or
    no aligned divisor exists.
    """
    if full <= target:
        return full
    t = (target // align) * align
    while t >= align:
        if full % t == 0:
            return t
        t -= align
    return full


def mean_pooling(last_hidden_state, attention_mask, *, rows_per_block=8,
                 seq_block=256, hidden_block=512):
    """MeanPooling.forward.

    last_hidden_state: (B, S, H) float32 or bfloat16
    attention_mask   : (B, S)    int / bool / float
    returns          : (B, H)    float32
    """
    B, S, H = last_hidden_state.shape

    # Batch tile: multiple of 8 dividing B (legal lane/sublane block), or the
    # whole batch if B is small / has no such divisor.
    TB = B if B <= rows_per_block else _pick_tile(B, rows_per_block, 8)
    # Sequence tile: multiple of 128 (mask lane dim) dividing S, or full S.
    TS = _pick_tile(S, seq_block, 128)
    # Hidden tile: lane-dense multiple of 128 dividing H, or full H.
    TH = _pick_tile(H, hidden_block, 128)

    # Mask is streamed as (B, 1, S) f32 so S sits on lanes inside the kernel
    # (keeps the mask tile's VMEM footprint dense; it is ~1/H of the traffic).
    mask3 = attention_mask.astype(jnp.float32).reshape(B, 1, S)

    return pl.pallas_call(
        _mean_pool_kernel,
        out_shape=jax.ShapeDtypeStruct((B, H), jnp.float32),
        grid_spec=pltpu.PrefetchScalarGridSpec(
            num_scalar_prefetch=0,
            grid=(B // TB, H // TH, S // TS),           # reduction (S) last
            in_specs=[
                pl.BlockSpec((TB, TS, TH), lambda b, h, s: (b, s, h)),
                pl.BlockSpec((TB, 1, TS), lambda b, h, s: (b, 0, s)),
            ],
            out_specs=pl.BlockSpec((TB, TH), lambda b, h, s: (b, h)),
            scratch_shapes=[pltpu.VMEM((TB, 1), jnp.float32)],
        ),
        compiler_params=pltpu.CompilerParams(
            dimension_semantics=("parallel", "parallel", "arbitrary"),
        ),
    )(last_hidden_state, mask3)


def _mean_pooling_reference(last_hidden_state, attention_mask):
    """Pure-JAX mirror of the PyTorch MeanPooling module."""
    mask = attention_mask.astype(jnp.float32)[..., None]           # (B, S, 1)
    sum_emb = jnp.sum(last_hidden_state.astype(jnp.float32) * mask, axis=1)
    sum_mask = jnp.maximum(jnp.sum(mask, axis=1), 1e-9)            # (B, 1)
    return sum_emb / sum_mask


def _make_inputs(key, B, S, H, dtype):
    k_h, k_len = jax.random.split(key)
    hidden = jax.random.normal(k_h, (B, S, H), jnp.float32).astype(dtype)
    # Ragged valid lengths; row 0 fully valid, row 1 fully padded (clamp path).
    lengths = jax.random.randint(k_len, (B,), 0, S + 1)
    lengths = lengths.at[0].set(S).at[1].set(0)
    mask = (jnp.arange(S)[None, :] < lengths[:, None]).astype(jnp.int32)
    return hidden, mask


if __name__ == "__main__":
    key = jax.random.PRNGKey(0)
    k1, k2 = jax.random.split(key)

    # --- Case 1: tiny shapes, single grid step along H and S (f32 path) ---
    B, S, H = 16, 16, 128
    hidden, attn = _make_inputs(k1, B, S, H, jnp.float32)
    out = jax.block_until_ready(mean_pooling(hidden, attn))
    ref = _mean_pooling_reference(hidden, attn)
    if not jnp.allclose(out, ref, atol=1e-5, rtol=1e-5):
        raise AssertionError("f32 Pallas MeanPooling does not match reference")

    # --- Case 2: exercise batch/H/S tiling + accumulator path (bf16 input) ---
    B, S, H = 16, 256, 256
    hidden_bf16, attn2 = _make_inputs(k2, B, S, H, jnp.bfloat16)
    out_bf16 = jax.block_until_ready(
        mean_pooling(hidden_bf16, attn2,
                     rows_per_block=4, seq_block=128, hidden_block=128))
    ref_bf16 = _mean_pooling_reference(hidden_bf16.astype(jnp.float32), attn2)
    if not jnp.allclose(out_bf16, ref_bf16, atol=1e-4, rtol=1e-4):
        raise AssertionError("bf16 Pallas MeanPooling does not match reference")

    print("KERNEL_OK")
</pallas_src>

<mosaic_0001>
module attributes {stable_mosaic.version = 11 : i64} {
  func.func @_mean_pool_kernel(%arg0: i32, %arg1: i32, %arg2: i32, %arg3: memref<8x16x128xf32, #tpu.memory_space<vmem>>, %arg4: memref<8x1x16xf32, #tpu.memory_space<vmem>>, %arg5: memref<8x128xf32, #tpu.memory_space<vmem>>, %arg6: memref<8x1xf32, #tpu.memory_space<vmem>>) attributes {dimension_semantics = [#tpu.dimension_semantics<parallel>, #tpu.dimension_semantics<parallel>, #tpu.dimension_semantics<arbitrary>], iteration_bounds = array<i64: 2, 1, 1>, scalar_prefetch = 0 : i64, scratch_operands = 1 : i64, tpu.core_type = #tpu.core_type<tc>, window_params = [{transform_indices = @transform_0, window_bounds = array<i64: 8, 16, 128>}, {transform_indices = @transform_1, window_bounds = array<i64: 8, 1, 16>}, {transform_indices = @transform_2, window_bounds = array<i64: 8, 128>}]} {
    %c0_i32 = arith.constant 0 : i32
    %0 = arith.cmpi eq, %arg2, %c0_i32 : i32
    %1 = arith.extui %0 : i1 to i32
    %c0_i32_0 = arith.constant 0 : i32
    %2 = arith.cmpi ne, %1, %c0_i32_0 : i32
    scf.if %2 {
      %cst_17 = arith.constant 0.000000e+00 : f32
      %19 = vector.broadcast %cst_17 : f32 to vector<8x128xf32>
      %c0_18 = arith.constant 0 : index
      %c0_19 = arith.constant 0 : index
      %20 = vector.load %arg5[%c0_18, %c0_19] : memref<8x128xf32, #tpu.memory_space<vmem>>, vector<8x128xf32>
      tpu.vector_store %arg5[%c0_18, %c0_19], %19 {strides = array<i32>} : memref<8x128xf32, #tpu.memory_space<vmem>>, vector<8x128xf32>,
      %cst_20 = arith.constant 0.000000e+00 : f32
      %21 = vector.broadcast %cst_20 : f32 to vector<8x1xf32>
      %c0_21 = arith.constant 0 : index
      %c0_22 = arith.constant 0 : index
      %22 = vector.load %arg6[%c0_21, %c0_22] : memref<8x1xf32, #tpu.memory_space<vmem>>, vector<8x1xf32>
      tpu.vector_store %arg6[%c0_21, %c0_22], %21 {strides = array<i32>} : memref<8x1xf32, #tpu.memory_space<vmem>>, vector<8x1xf32>,
    } else {
    }
    %c0 = arith.constant 0 : index
    %c0_1 = arith.constant 0 : index
    %c0_2 = arith.constant 0 : index
    %3 = vector.load %arg3[%c0, %c0_1, %c0_2] : memref<8x16x128xf32, #tpu.memory_space<vmem>>, vector<8x16x128xf32>
    %c0_3 = arith.constant 0 : index
    %c0_4 = arith.constant 0 : index
    %c0_5 = arith.constant 0 : index
    %4 = vector.load %arg4[%c0_3, %c0_4, %c0_5] : memref<8x1x16xf32, #tpu.memory_space<vmem>>, vector<8x1x16xf32>
    %5 = vector.shape_cast %4 : vector<8x1x16xf32> to vector<8x16x1xf32>
    %c0_6 = arith.constant 0 : index
    %c0_7 = arith.constant 0 : index
    %6 = vector.load %arg5[%c0_6, %c0_7] : memref<8x128xf32, #tpu.memory_space<vmem>>, vector<8x128xf32>
    %7 = vector.broadcast %5 : vector<8x16x1xf32> to vector<8x16x128xf32>
    %8 = arith.mulf %3, %7 : vector<8x16x128xf32>
    %cst = arith.constant dense<0.000000e+00> : vector<8x128xf32>
    %9 = vector.multi_reduction <add>, %8, %cst [1] : vector<8x16x128xf32> to vector<8x128xf32>
    %10 = arith.addf %6, %9 : vector<8x128xf32>
    %c0_8 = arith.constant 0 : index
    %c0_9 = arith.constant 0 : index
    %11 = vector.load %arg5[%c0_8, %c0_9] : memref<8x128xf32, #tpu.memory_space<vmem>>, vector<8x128xf32>
    tpu.vector_store %arg5[%c0_8, %c0_9], %10 {strides = array<i32>} : memref<8x128xf32, #tpu.memory_space<vmem>>, vector<8x128xf32>,
    %c0_10 = arith.constant 0 : index
    %c0_11 = arith.constant 0 : index
    %12 = vector.load %arg6[%c0_10, %c0_11] : memref<8x1xf32, #tpu.memory_space<vmem>>, vector<8x1xf32>
    %cst_12 = arith.constant dense<0.000000e+00> : vector<8x1xf32>
    %13 = vector.multi_reduction <add>, %4, %cst_12 [2] : vector<8x1x16xf32> to vector<8x1xf32>
    %14 = arith.addf %12, %13 : vector<8x1xf32>
    %c0_13 = arith.constant 0 : index
    %c0_14 = arith.constant 0 : index
    %15 = vector.load %arg6[%c0_13, %c0_14] : memref<8x1xf32, #tpu.memory_space<vmem>>, vector<8x1xf32>
    tpu.vector_store %arg6[%c0_13, %c0_14], %14 {strides = array<i32>} : memref<8x1xf32, #tpu.memory_space<vmem>>, vector<8x1xf32>,
    %c0_i32_15 = arith.constant 0 : i32
    %16 = arith.cmpi eq, %arg2, %c0_i32_15 : i32
    %17 = arith.extui %16 : i1 to i32
    %c0_i32_16 = arith.constant 0 : i32
    %18 = arith.cmpi ne, %17, %c0_i32_16 : i32
    scf.if %18 {
      %c0_17 = arith.constant 0 : index
      %c0_18 = arith.constant 0 : index
      %19 = vector.load %arg6[%c0_17, %c0_18] : memref<8x1xf32, #tpu.memory_space<vmem>>, vector<8x1xf32>
      %cst_19 = arith.constant 9.99999971E-10 : f32
      %20 = vector.broadcast %cst_19 : f32 to vector<8x1xf32>
      %21 = arith.maximumf %19, %20 : vector<8x1xf32>
      %22 = tpu.reciprocal %21 {approx = true} : vector<8x1xf32> -> vector<8x1xf32>
      %c0_20 = arith.constant 0 : index
      %c0_21 = arith.constant 0 : index
      %23 = vector.load %arg5[%c0_20, %c0_21] : memref<8x128xf32, #tpu.memory_space<vmem>>, vector<8x128xf32>
      %24 = vector.broadcast %22 : vector<8x1xf32> to vector<8x128xf32>
      %25 = arith.mulf %23, %24 : vector<8x128xf32>
      %c0_22 = arith.constant 0 : index
      %c0_23 = arith.constant 0 : index
      %26 = vector.load %arg5[%c0_22, %c0_23] : memref<8x128xf32, #tpu.memory_space<vmem>>, vector<8x128xf32>
      tpu.vector_store %arg5[%c0_22, %c0_23], %25 {strides = array<i32>} : memref<8x128xf32, #tpu.memory_space<vmem>>, vector<8x128xf32>,
    } else {
    }
    return
  }
  func.func @transform_0(%arg0: i32, %arg1: i32, %arg2: i32) -> (i32, i32, i32) {
    %c0_i32 = arith.constant 0 : i32
    return %arg0, %arg2, %arg1 : i32, i32, i32
  }
  func.func @transform_1(%arg0: i32, %arg1: i32, %arg2: i32) -> (i32, i32, i32) {
    %c0_i32 = arith.constant 0 : i32
    %c0_i32_0 = arith.constant 0 : i32
    return %arg0, %c0_i32, %arg2 : i32, i32, i32
  }
  func.func @transform_2(%arg0: i32, %arg1: i32, %arg2: i32) -> (i32, i32) {
    %c0_i32 = arith.constant 0 : i32
    return %arg0, %arg1 : i32, i32
  }
}

</mosaic_0001>

<bundles_post_ra>
// kernel: tpu_custom_call.1
= control target key start
LH: loop header
LB: loop body
LE: loop exit
PB: predicated region body
PF: predicated region fallthrough
CT: control target
= control target key end

     0   :  { %7 = vsyncpa [#allocation4], 0  ;;  %s1185_s0 = inlined_call_operand.hbm [shape: f32[16,16,128], index: 0, kind: input, shape index: {}]   ;;  %s1186_s1 = inlined_call_operand.hbm [shape: f32[16,1,16], index: 1, kind: input, shape index: {}]   ;;  %s1187_s2 = inlined_call_operand.hbm [shape: f32[16,128], index: 2, kind: output, shape index: {}]  }
   0x1   :  { %9 = vsyncpa [#allocation4 + $0x1], 0 }
   0x2   :  { %10 = vsyncpa [#allocation7], 0 }
   0x3   :  { %12 = vsyncpa [#allocation7 + $0x1], 0 }
   0x4   :  { %13 = vsyncpa [#allocation5], 0 }
   0x5   :  { %15 = vsyncpa [#allocation5 + $0x1], 0  ;;  %s916_s9 = smov 0   ;;  %s918_s10 = smov 0  }
   0x6   :  { %s920_s11 = smov 0   ;;  %s922_s12 = smov 0  }
   0x7   :  { %s924_s13 = smov 0   ;;  %s926_s14 = smov 0  }
   0x8 LB: > { %s646_s15 = sadd.s32 4294967295, %s890_s14   ;;  %s647_s16 = sadd.s32 4294967294, %s890_s14   ;;  %s890_s14 = sphi %s926_s14, %s21_s14   ;;  %s886_s13 = sphi %s924_s13, %s1205_s13   ;;  %s882_s12 = sphi %s922_s12, %s1204_s12   ;;  %s878_s11 = sphi %s920_s11, %s1203_s11   ;;  %s874_s10 = sphi %s918_s10, %s1202_s10   ;;  %s870_s9 = sphi %s916_s9, %s1201_s9  }
   0x9   : > { %s40_s17 = sadd.s32 1, %s886_s13  ;;  %s51_s18 = sadd.s32 1, %s878_s11 }
   0xa   : > { %p42_p0 = scmp.ge.s32.totalorder %s40_s17, 2  ;;  %p58_p1 = scmp.ne.s32.totalorder %s878_s11, %s874_s10 }
   0xb   : > { %p59_p2 = scmp.eq.s32.totalorder %s890_s14, 0  ;;  %p64_p3 = scmp.ne.s32.totalorder %s874_s10, %s870_s9 }
   0xc   : > { %s1207_s17 = smov (%p42_p0, %s40_s17), 0  ;;  %p65_p5 = scmp.eq.s32.totalorder %s646_s15, 0 }
   0xd   : > { %p957_p4 = por %p59_p2, %p58_p1  ;;  %s44_s20 = ssub.s32 %s886_s13, %s1207_s17 }
   0xe   : > { %p118_p6 = scmp.eq.s32.totalorder %s646_s15, 1  ;;  %p49_p7 = scmp.eq.s32.totalorder %s44_s20, 0 }
   0xf   : > { %p963_p8 = por %p65_p5, %p64_p3  ;;  %p124_p10 = scmp.eq.s32.totalorder %s647_s16, 1 }
  0x10   : > { %p967_p9 = por %p118_p6, %p58_p1  ;;  %p685_p13 = scmp.lt.s32.totalorder %s890_s14, 2 }
  0x11   : > { %s1191_s21 = scalar_select %p963_p8, 1, 0 }
  0x12   : > { %s1192_s22 = scalar_select %p967_p9, 1, 0 }
  0x13   : > { %s972_s23 = scalar_select %p49_p7, %s878_s11, %s51_s18  }
  0x14   : > { %p974_p11 = por %p124_p10, %p64_p3  ;;  %s981_s25 = sand.u32 1, %s878_s11  }
  0x15   : > { %s650_s26 = sshll.u32 %s981_s25, 7  ;;  %s666_s27 = sshll.u32 %s886_s13, 11 }
  0x16   : > { %s1193_s24 = scalar_select %p974_p11, 1, 0 }
  0x17   : > { %s988_s30 = scalar_lea.hbm %s1185_s0, %s666_s27  ;;  %s148_s3 = scalar_lea.vmem [#allocation3], %s650_s26 }
  0x18   : > { %s159_s4 = sshll.u32 %s148_s3, 4  ;;  %p994_p0 = pnand %p685_p13, %p957_p4  ;;  %s990_s4 = int_to_ptr.vmem [resolvable:$true] %s159_s4 }
  0x19   : > { %s145_s6 = scalar_lea.sflag [#allocation4], %s981_s25  ;;  %s744_s7 = scalar_lea.hbm %s988_s30, 2048 }
  0x1a   : > { %p745_p2 = scmp.ne.s32.totalorder %s988_s30, %s744_s7  ;;  %p746_p3 = pneg %p994_p0 }
  0x1b   : > { %s749_s16 = scalar_lea.hbm %s1185_s0, 4096  ;;  %p750_p4 = scmp.lt.u32.totalorder %s988_s30, %s1185_s0 }
  0x1c   : > { %p747_p5 = pnand %p746_p3, %p745_p2  ;;  %p751_p7 = scmp.lt.u32.totalorder %s749_s16, %s744_s7 }
  0x1d   : > { %p753_p13 = scmp.lt.u32.totalorder %s744_s7, %s988_s30 }
  0x1e   : > { %p748_p6 = pneg %p747_p5  ;;  %p752_p10 = por %p751_p7, %p750_p4 }
  0x20   : > { %p754_p12 = por %p753_p13, %p752_p10 }
  0x22   : > { %p755_p1 = pnand %p754_p12, %p748_p6 }
  0x24   : > { %758 = shalt.err (!%p755_p1)
}
  0x25   : > { %s759_s20 = scalar_lea.vmem %s990_s4, 2048  ;;  %s892_s26 = smov [#allocation3]  }
  0x26   : > { %p760_p2 = scmp.ne.s32.totalorder %s990_s4, %s759_s20  ;;  %s764_s27 = sshll.u32 %s892_s26, 4  ;;  %s765_s27 = int_to_ptr.vmem [resolvable:$false] %s764_s27 }
  0x27   : > { %s766_s28 = scalar_lea.vmem %s765_s27, 4096  ;;  %p767_p9 = scmp.lt.s32.totalorder %s990_s4, %s765_s27 }
  0x28   : > { %p762_p5 = pnand %p760_p2, %p746_p3  ;;  %p768_p4 = scmp.lt.s32.totalorder %s766_s28, %s759_s20 }
  0x2a   : > { %p763_p11 = pneg %p762_p5  ;;  %p769_p7 = por %p768_p4, %p767_p9 }
  0x2c   : > { %p770_p10 = pnand %p769_p7, %p763_p11 }
  0x2e   : > { %773 = shalt.err (!%p770_p10)
}
  0x2f   : > { %s893_s29 = smov 128   ;;  %s894_s3 = smov 8  }
  0x30   : > { %677 = dma.hbm_to_vmem [thread:$0]  (!%p994_p0), %s988_s30, 2048, %s990_s4, %s145_s6, %s893_s29, %s893_s29, %s894_s3  }
  0x31   : > { %p189_p12 = scmp.lt.s32.totalorder %s890_s14, 3  ;;  %s654_s7 = sshll.u32 %s981_s25, 3 }
  0x32   : > { %s667_s8 = sshll.u32 %s886_s13, 7  ;;  %p1195_p9 = scmp.ge.s32.totalorder %s890_s14, 1 }
  0x33   : > { %s1039_s19 = scalar_lea.hbm %s1186_s1, %s667_s8  ;;  %s173_s20 = scalar_lea.vmem [#allocation6], %s654_s7 }
  0x34   : > { %p1032_p11 = pnand %p1195_p9, %p189_p12  ;;  %s181_s26 = sshll.u32 %s173_s20, 4  ;;  %s1041_s26 = int_to_ptr.vmem [resolvable:$true] %s181_s26 }
  0x35   : > { %s170_s30 = scalar_lea.sflag [#allocation7], %s981_s25  ;;  %s774_s4 = scalar_lea.hbm %s1039_s19, 128 }
  0x36   : > { %p775_p1 = scmp.ne.s32.totalorder %s1039_s19, %s774_s4  ;;  %s779_s28 = scalar_lea.hbm %s1186_s1, 256 }
  0x37   : > { %p780_p2 = scmp.lt.u32.totalorder %s1039_s19, %s1186_s1  ;;  %p781_p5 = scmp.lt.u32.totalorder %s779_s28, %s774_s4 }
  0x38   : > { %p777_p6 = pnand %p775_p1, %p746_p3  ;;  %p783_p7 = scmp.lt.u32.totalorder %s774_s4, %s1039_s19 }
  0x39   : > { %p782_p4 = por %p781_p5, %p780_p2 }
  0x3a   : > { %p778_p13 = pneg %p777_p6 }
  0x3b   : > { %p784_p10 = por %p783_p7, %p782_p4 }
  0x3d   : > { %p785_p12 = pnand %p784_p10, %p778_p13 }
  0x3f   : > { %788 = shalt.err (!%p785_p12)
}
  0x40   : > { %s789_s7 = scalar_lea.vmem %s1041_s26, 128  ;;  %s895_s8 = smov [#allocation6]  }
  0x41   : > { %p790_p9 = scmp.ne.s32.totalorder %s1041_s26, %s789_s7  ;;  %s794_s16 = sshll.u32 %s895_s8, 4  ;;  %s795_s16 = int_to_ptr.vmem [resolvable:$false] %s794_s16 }
  0x42   : > { %s796_s18 = scalar_lea.vmem %s795_s16, 256  ;;  %p797_p8 = scmp.lt.s32.totalorder %s1041_s26, %s795_s16 }
  0x43   : > { %p792_p1 = pnand %p790_p9, %p746_p3  ;;  %p798_p2 = scmp.lt.s32.totalorder %s796_s18, %s789_s7 }
  0x45   : > { %p793_p6 = pneg %p792_p1  ;;  %p799_p5 = por %p798_p2, %p797_p8 }
  0x47   : > { %p800_p4 = pnand %p799_p5, %p793_p6 }
  0x49   : > { %803 = shalt.err (!%p800_p4)
}
  0x4a   : > { %s896_s20 = smov 16   ;;  %s897_s4 = smov 1  }
  0x4b   : > { %680 = dma.hbm_to_vmem [thread:$0]  (!%p994_p0), %s1039_s19, 128, %s1041_s26, %s170_s30, %s896_s20, %s896_s20, %s897_s4  }
  0x4c   : > { %193 = sbr.rel (%p1032_p11) target bundleno = 414 (0x19e), region = 28  ;;  %s1072_s6 = sand.u32 (!%p1032_p11), 1, %s874_s10  }
  0x4d   : > { %s658_s27 = sshll.u32 (!%p1032_p11), %s1072_s6, 7  ;;  %s196_s28 = scalar_lea.sflag (!%p1032_p11), [#allocation4], %s1072_s6 }
  0x4e   : > { %s1076_s29 = scalar_lea.vmem (!%p1032_p11), [#allocation3], %s658_s27  ;;  %p1197_p8 = scmp.ne.s32.totalorder (!%p1032_p11), %s1191_s21, 0 }
  0x53   : > { %857 = dma.done.wait (%p1197_p8), %s196_s28, 2048  }
  0x54   : > { %859 = vsyncadd (%p1197_p8), %s196_s28, 4294965248  ;;  %s659_s25 = sshll.u32 %s1072_s6, 3  ;;  %s205_s5 = scalar_lea.sflag [#allocation7], %s1072_s6 }
  0x55   : > { %s208_s15 = scalar_lea.vmem [#allocation6], %s659_s25 }
  0x56   : > { %861 = dma.done.wait (%p1197_p8), %s205_s5, 128  }
  0x57   : > { %863 = vsyncadd (%p1197_p8), %s205_s5, 4294967168  ;;  %vm455_vm0 = vcmask 122880   ;;  %v261_v0 = vld [vmem:[%s208_s15 + $0x1] sm:$0x1]  ;;  %v260_v1 = vld [vmem:[%s208_s15] sm:$0x1]  ;;  %v268_v16 = vlaneseq }
  0x58   : > { %v262_v2 = vld [vmem:[%s208_s15 + $0x2] sm:$0x1]  ;;  %v459_v3 = vsel %vm455_vm0, %v261_v0, 0.0  ;;  %v456_v4 = vsel %vm455_vm0, %v260_v1, 0.0  ;;  %v263_v5 = vld [vmem:[%s208_s15 + $0x3] sm:$0x1] }
  0x59   : > { %460 = vadd.xlane.f32.xlu0 %v459_v3  ;;  %457 = vadd.xlane.f32.xlu1 %v456_v4  ;;  %v462_v6 = vsel %vm455_vm0, %v262_v2, 0.0  ;;  %v465_v7 = vsel %vm455_vm0, %v263_v5, 0.0  ;;  %v264_v8 = vld [vmem:[%s208_s15 + $0x4] sm:$0x1]  ;;  %v265_v9 = vld [vmem:[%s208_s15 + $0x5] sm:$0x1] }
  0x5a   : > { %v468_v10 = vsel %vm455_vm0, %v264_v8, 0.0  ;;  %v471_v11 = vsel %vm455_vm0, %v265_v9, 0.0  ;;  %v266_v12 = vld [vmem:[%s208_s15 + $0x6] sm:$0x1]  ;;  %v267_v13 = vld [vmem:[%s208_s15 + $0x7] sm:$0x1] }
  0x5b   : > { %v474_v14 = vsel %vm455_vm0, %v266_v12, 0.0  ;;  %v477_v15 = vsel %vm455_vm0, %v267_v13, 0.0  ;;  %v269_v17 = vshrl.u32 %v268_v16, 7  ;;  %vm242_vm1 = vcmask 7168   ;;  %v245_v50 = vld [vmem:[%s1076_s29 + $0x8] sm:$0xff]  ;;  %v244_v51 = vld [vmem:[%s1076_s29] sm:$0xff] }
  0x5c   : > { %v898_v19 = vmov 0.0   ;;  %v899_v22 = vmov 0   ;;  %vm437_vm2 = vcmask 1041409   ;;  %vm439_vm3 = vcmask 1042434   ;;  %v246_v61 = vld [vmem:[%s1076_s29 + $0x10] sm:$0xff]  ;;  %v248_v4 = vld [vmem:[%s1076_s29 + $0x20] sm:$0xff] }
  0x5d   : > { %463 = vadd.xlane.f32.xlu0 %v462_v6  ;;  %466 = vadd.xlane.f32.xlu1 %v465_v7  ;;  %v270_v18 = vsub.s32 0, %v269_v17  ;;  %243 = vst.msk [vmem:[#allocation2] sm:$0xff] %vm242_vm1, %v898_v19  ;;  %vm441_vm4 = vcmask 1043459   ;;  %vm443_vm5 = vcmask 1044484   ;;  %vm445_vm6 = vcmask 1045509   ;;  %v251_v19 = vld [vmem:[%s1076_s29 + $0x38] sm:$0xff] }
  0x5e   : > { %741 = vset.pattern.permute.xlu0 %v899_v22  ;;  %vm447_vm7 = vcmask 1046534   ;;  %vm449_vm8 = vcmask 1047559   ;;  %s662_s21 = sshll.u32 %s882_s12, 7  ;;  %s233_s19 = scalar_lea.vmem [#allocation8], %s659_s25 }
  0x5f   : > { %v271_v20 = vrot.slane %v260_v1, %v270_v18  ;;  %v282_v21 = vrot.slane %v261_v0, %v270_v18  ;;  %v293_v23 = vrot.slane %v262_v2, %v270_v18  ;;  %v304_v24 = vrot.slane %v263_v5, %v270_v18  ;;  %v247_v0 = vld [vmem:[%s1076_s29 + $0x18] sm:$0xff]  ;;  %s535_s26 = sshll.u32 %s233_s19, 4  ;;  %s1136_s7 = scalar_lea.hbm %s1187_s2, %s662_s21  ;;  %s1138_s26 = int_to_ptr.vmem [resolvable:$true] %s535_s26 }
  0x60   : > { %v315_v25 = vrot.slane %v264_v8, %v270_v18  ;;  %v326_v26 = vrot.slane %v265_v9, %v270_v18  ;;  %v337_v27 = vrot.slane %v266_v12, %v270_v18  ;;  %v348_v28 = vrot.slane %v267_v13, %v270_v18  ;;  %v249_v9 = vld [vmem:[%s1076_s29 + $0x28] sm:$0xff]  ;;  %s521_s8 = scalar_lea.sflag [#allocation5], %s1072_s6  ;;  %s804_s16 = scalar_lea.vmem %s1138_s26, 128 }
  0x61   : > { %469 = vadd.xlane.f32.xlu0 %v468_v10  ;;  %472 = vadd.xlane.f32.xlu1 %v471_v11  ;;  %p805_p0 = scmp.ne.s32.totalorder %s1138_s26, %s804_s16  ;;  %p1198_p3 = scmp.ne.s32.totalorder %s1192_s22, 0 }
  0x62   : > { %s900_s12 = smov [#allocation8]  }
  0x63   : > { %p806_p11 = pnand %p805_p0, %p1198_p3  ;;  %s808_s18 = sshll.u32 %s900_s12, 4  ;;  %s809_s18 = int_to_ptr.vmem [resolvable:$false] %s808_s18 }
  0x64   : > { %v454_v49 = vld [vmem:[#allocation2] sm:$0xff]  ;;  %s810_s20 = scalar_lea.vmem %s809_s18, 256  ;;  %p811_p7 = scmp.lt.s32.totalorder %s1138_s26, %s809_s18 }
  0x65   : > { %475 = vadd.xlane.f32.xlu0 %v474_v14  ;;  %478 = vadd.xlane.f32.xlu1 %v477_v15  ;;  %v250_v14 = vld [vmem:[%s1076_s29 + $0x30] sm:$0xff]  ;;  %p807_p13 = pneg %p806_p11  ;;  %p812_p10 = scmp.lt.s32.totalorder %s810_s20, %s804_s16 }
  0x67   : > { %p813_p12 = por %p812_p10, %p811_p7 }
  0x69   : > { %p814_p9 = pnand %p813_p12, %p807_p13 }
  0x76   : > { %277 = vbcast.lane.b32.xlu1 %v271_v20, 264 }
  0x7a   : > { %284 = vbcast.lane.b32.xlu1 %v282_v21, 256 }
  0x7b   : > { %273 = vbcast.lane.b32.xlu0 %v271_v20, 256 }
  0x7e   : > { %288 = vbcast.lane.b32.xlu1 %v282_v21, 264 }
  0x7f   : > { %295 = vbcast.lane.b32.xlu0 %v293_v23, 256 }
  0x82   : > { %299 = vbcast.lane.b32.xlu1 %v293_v23, 264 }
  0x83   : > { %306 = vbcast.lane.b32.xlu0 %v304_v24, 256 }
  0x86   : > { %310 = vbcast.lane.b32.xlu1 %v304_v24, 264  ;;  %v252_v24 = vld [vmem:[%s1076_s29 + $0x40] sm:$0xff] }
  0x87   : > { %317 = vbcast.lane.b32.xlu0 %v315_v25, 256 }
  0x8a   : > { %321 = vbcast.lane.b32.xlu1 %v315_v25, 264 }
  0x8b   : > { %328 = vbcast.lane.b32.xlu0 %v326_v26, 256 }
  0x8e   : > { %332 = vbcast.lane.b32.xlu1 %v326_v26, 264 }
  0x8f   : > { %339 = vbcast.lane.b32.xlu0 %v337_v27, 256 }
  0x92   : > { %343 = vbcast.lane.b32.xlu1 %v337_v27, 264 }
  0x93   : > { %350 = vbcast.lane.b32.xlu0 %v348_v28, 256 }
  0x96   : > { %354 = vbcast.lane.b32.xlu1 %v348_v28, 264 }
  0xe6   : > { %v461_v29 = vpop.xlane.xlu0 %460  ;;  %v458_v30 = vpop.xlane.xlu1 %457 }
  0xe7   : > { %v488_v31 = vrot.slane %v461_v29, 7 }
  0xe9   : > { %v489_v35 = vsel %vm437_vm2, %v488_v31, %v458_v30  ;;  %v253_v30 = vld [vmem:[%s1076_s29 + $0x48] sm:$0xff] }
  0xea   : > { %v464_v32 = vpop.xlane.xlu0 %463  ;;  %v467_v33 = vpop.xlane.xlu1 %466 }
  0xeb   : > { %v490_v34 = vrot.slane %v464_v32, 6  ;;  %v492_v36 = vrot.slane %v467_v33, 5 }
  0xed   : > { %v491_v37 = vsel %vm439_vm3, %v490_v34, %v489_v35 }
  0xee   : > { %v470_v38 = vpop.xlane.xlu0 %469  ;;  %v473_v39 = vpop.xlane.xlu1 %472  ;;  %v493_v41 = vsel %vm441_vm4, %v492_v36, %v491_v37 }
  0xef   : > { %v494_v40 = vrot.slane %v470_v38, 4  ;;  %v496_v42 = vrot.slane %v473_v39, 3 }
  0xf1   : > { %v495_v43 = vsel %vm443_vm5, %v494_v40, %v493_v41  ;;  %v254_v40 = vld [vmem:[%s1076_s29 + $0x50] sm:$0xff] }
  0xf2   : > { %v476_v44 = vpop.xlane.xlu0 %475  ;;  %v479_v45 = vpop.xlane.xlu1 %478  ;;  %v497_v48 = vsel %vm445_vm6, %v496_v42, %v495_v43 }
  0xf3   : > { %v498_v46 = vrot.slane %v476_v44, 2  ;;  %v500_v47 = vrot.slane %v479_v45, 1 }
  0xf5   : > { %v499_v52 = vsel %vm447_vm7, %v498_v46, %v497_v48  ;;  %v255_v48 = vld [vmem:[%s1076_s29 + $0x58] sm:$0xff] }
  0xf6   : > { %v501_v53 = vsel %vm449_vm8, %v500_v47, %v499_v52  ;;  %v278_v54 = vpop.permute.xlu1 %277  ;;  %v274_v55 = vpop.permute.xlu0 %273 }
  0xf7   : > { %v503_v56 = vadd.f32 %v501_v53, %v454_v49  ;;  %v358_v57 = vmul.f32 %v278_v54, %v245_v50  ;;  %v357_v58 = vmul.f32 %v274_v55, %v244_v51  ;;  %v256_v51 = vld [vmem:[%s1076_s29 + $0x60] sm:$0xff] }
  0xf9   : > { %505 = vst.msk [vmem:[#allocation2] sm:$0xff] %vm242_vm1, %v503_v56  ;;  %v373_v59 = vadd.f32 %v358_v57, %v357_v58  ;;  %v257_v57 = vld [vmem:[%s1076_s29 + $0x68] sm:$0xff] }
  0xfa   : > { %v285_v60 = vpop.permute.xlu1 %284  ;;  %v296_v62 = vpop.permute.xlu0 %295 }
  0xfb   : > { %v374_v63 = vrot.slane %v373_v59, 4  ;;  %v359_v1 = vmul.f32 %v285_v60, %v246_v61  ;;  %v361_v12 = vmul.f32 %v296_v62, %v248_v4 }
  0xfd   : > { %v375_v2 = vadd.f32 %v374_v63, %v373_v59 }
  0xfe   : > { %v289_v3 = vpop.permute.xlu1 %288  ;;  %v307_v5 = vpop.permute.xlu0 %306 }
  0xff   : > { %v360_v6 = vmul.f32 %v289_v3, %v247_v0  ;;  %v376_v8 = vrot.slane %v375_v2, 2  ;;  %v363_v22 = vmul.f32 %v307_v5, %v250_v14 }
 0x100   : > { %v509_v7 = vld [vmem:[#allocation2] sm:$0xff] }
 0x101   : > { %v510_v10 = vmax.f32 %v509_v7, 1e-09  ;;  %v380_v11 = vadd.f32 %v360_v6, %v359_v1  ;;  %v377_v18 = vadd.f32 %v376_v8, %v375_v2  ;;  %v258_v1 = vld [vmem:[%s1076_s29 + $0x70] sm:$0xff]  ;;  %v259_v7 = vld [vmem:[%s1076_s29 + $0x78] sm:$0xff] }
 0x102   : > { %v300_v13 = vpop.permute.xlu1 %299  ;;  %v318_v15 = vpop.permute.xlu0 %317 }
 0x103   : > { %742 = vrcp.f32 %v510_v10  ;;  %v381_v16 = vrot.slane %v380_v11, 4  ;;  %v362_v17 = vmul.f32 %v300_v13, %v249_v9  ;;  %v378_v29 = vrot.slane %v377_v18, 1 }
 0x104   : > { %v365_v34 = vmul.f32 %v318_v15, %v252_v24 }
 0x105   : > { %v382_v20 = vadd.f32 %v381_v16, %v380_v11  ;;  %v387_v21 = vadd.f32 %v362_v17, %v361_v12  ;;  %v379_v41 = vadd.f32 %v378_v29, %v377_v18 }
 0x106   : > { %v311_v23 = vpop.permute.xlu1 %310  ;;  %v329_v25 = vpop.permute.xlu0 %328 }
 0x107   : > { %v383_v26 = vrot.slane %v382_v20, 2  ;;  %v388_v27 = vrot.slane %v387_v21, 4  ;;  %v364_v28 = vmul.f32 %v311_v23, %v251_v19  ;;  %v367_v50 = vmul.f32 %v329_v25, %v254_v40 }
 0x109   : > { %v384_v31 = vadd.f32 %v383_v26, %v382_v20  ;;  %v389_v32 = vadd.f32 %v388_v27, %v387_v21  ;;  %v394_v33 = vadd.f32 %v364_v28, %v363_v22 }
 0x10a   : > { %v322_v35 = vpop.permute.xlu1 %321  ;;  %v340_v42 = vpop.permute.xlu0 %339 }
 0x10b   : > { %v385_v36 = vrot.slane %v384_v31, 1  ;;  %v390_v37 = vrot.slane %v389_v32, 2  ;;  %v395_v38 = vrot.slane %v394_v33, 4  ;;  %v366_v39 = vmul.f32 %v322_v35, %v253_v30 }
 0x10c   : > { %v369_v61 = vmul.f32 %v340_v42, %v256_v51 }
 0x10d   : > { %v743_v43 = vpop.eup %742  ;;  %v386_v44 = vadd.f32 %v385_v36, %v384_v31  ;;  %v391_v45 = vadd.f32 %v390_v37, %v389_v32  ;;  %v396_v46 = vadd.f32 %v395_v38, %v394_v33  ;;  %v401_v47 = vadd.f32 %v366_v39, %v365_v34 }
 0x10e   : > { %515 = vperm.xlu0 %741, %v743_v43   ;;  %v333_v49 = vpop.permute.xlu1 %332  ;;  %v351_v0 = vpop.permute.xlu0 %350 }
 0x10f   : > { %v392_v52 = vrot.slane %v391_v45, 1  ;;  %v397_v53 = vrot.slane %v396_v46, 2  ;;  %v402_v54 = vrot.slane %v401_v47, 4  ;;  %v438_v55 = vsel %vm437_vm2, %v386_v44, %v379_v41 }
 0x110   : > { %v368_v56 = vmul.f32 %v333_v49, %v255_v48  ;;  %v371_v11 = vmul.f32 %v351_v0, %v258_v1 }
 0x111   : > { %v393_v58 = vadd.f32 %v392_v52, %v391_v45  ;;  %v398_v59 = vadd.f32 %v397_v53, %v396_v46  ;;  %v403_v60 = vadd.f32 %v402_v54, %v401_v47 }
 0x112   : > { %v408_v62 = vadd.f32 %v368_v56, %v367_v50  ;;  %v344_v63 = vpop.permute.xlu1 %343 }
 0x113   : > { %v440_v2 = vsel %vm439_vm3, %v393_v58, %v438_v55  ;;  %v399_v3 = vrot.slane %v398_v59, 1  ;;  %v404_v4 = vrot.slane %v403_v60, 2  ;;  %v370_v5 = vmul.f32 %v344_v63, %v257_v57 }
 0x114   : > { %v409_v6 = vrot.slane %v408_v62, 4 }
 0x115   : > { %v400_v8 = vadd.f32 %v399_v3, %v398_v59  ;;  %v405_v9 = vadd.f32 %v404_v4, %v403_v60  ;;  %v415_v10 = vadd.f32 %v370_v5, %v369_v61 }
 0x116   : > { %v410_v12 = vadd.f32 %v409_v6, %v408_v62  ;;  %v355_v13 = vpop.permute.xlu1 %354 }
 0x117   : > { %v442_v14 = vsel %vm441_vm4, %v400_v8, %v440_v2  ;;  %v406_v15 = vrot.slane %v405_v9, 1  ;;  %v416_v16 = vrot.slane %v415_v10, 4  ;;  %v372_v17 = vmul.f32 %v355_v13, %v259_v7 }
 0x118   : > { %v411_v18 = vrot.slane %v410_v12, 2 }
 0x119   : > { %v407_v19 = vadd.f32 %v406_v15, %v405_v9  ;;  %v417_v20 = vadd.f32 %v416_v16, %v415_v10  ;;  %v422_v21 = vadd.f32 %v372_v17, %v371_v11 }
 0x11a   : > { %v412_v22 = vadd.f32 %v411_v18, %v410_v12 }
 0x11b   : > { %v444_v23 = vsel %vm443_vm5, %v407_v19, %v442_v14  ;;  %v418_v24 = vrot.slane %v417_v20, 2  ;;  %v423_v25 = vrot.slane %v422_v21, 4 }
 0x11c   : > { %v413_v26 = vrot.slane %v412_v22, 1 }
 0x11d   : > { %v419_v27 = vadd.f32 %v418_v24, %v417_v20  ;;  %v424_v28 = vadd.f32 %v423_v25, %v422_v21 }
 0x11e   : > { %v414_v29 = vadd.f32 %v413_v26, %v412_v22 }
 0x11f   : > { %v420_v30 = vrot.slane %v419_v27, 1  ;;  %v425_v31 = vrot.slane %v424_v28, 2 }
 0x120   : > { %v446_v32 = vsel %vm445_vm6, %v414_v29, %v444_v23 }
 0x121   : > { %v421_v33 = vadd.f32 %v420_v30, %v419_v27  ;;  %v426_v34 = vadd.f32 %v425_v31, %v424_v28 }
 0x123   : > { %v448_v35 = vsel %vm447_vm7, %v421_v33, %v446_v32  ;;  %v427_v36 = vrot.slane %v426_v34, 1 }
 0x125   : > { %v428_v37 = vadd.f32 %v427_v36, %v426_v34 }
 0x127   : > { %v450_v38 = vsel %vm449_vm8, %v428_v37, %v448_v35 }
 0x18d   : > { %v516_v39 = vpop.permute.xlu0 %515 }
 0x18e   : > { %v518_v40 = vmul.f32 %v516_v39, %v450_v38 }
 0x190   : > { %519 = vst [vmem:[%s233_s19] sm:$0xff] %v518_v40 }
 0x191   : > { %817 = shalt.err (!%p814_p9)
}
 0x192   : > { %s818_s4 = scalar_lea.hbm %s1136_s7, 128  ;;  %s822_s28 = scalar_lea.hbm %s1187_s2, 256 }
 0x193   : > { %p819_p1 = scmp.ne.s32.totalorder %s1136_s7, %s818_s4  ;;  %p823_p5 = scmp.lt.u32.totalorder %s1136_s7, %s1187_s2 }
 0x194   : > { %p824_p4 = scmp.lt.u32.totalorder %s822_s28, %s818_s4  ;;  %p826_p0 = scmp.lt.u32.totalorder %s818_s4, %s1136_s7 }
 0x195   : > { %p820_p6 = pnand %p819_p1, %p1198_p3 }
 0x196   : > { %p825_p8 = por %p824_p4, %p823_p5 }
 0x197   : > { %p821_p2 = pneg %p820_p6 }
 0x198   : > { %p827_p11 = por %p826_p0, %p825_p8 }
 0x19a   : > { %p828_p13 = pnand %p827_p11, %p821_p2 }
 0x19c   : > { %831 = shalt.err (!%p828_p13)
}
 0x19d   : > { %672 = dma.vmem_to_hbm [thread:$0]  (%p1198_p3), %s1138_s26, 128, %s1136_s7, %s521_s8  }
 0x19e PF: > { %s547_s5 = sand.u32 1, %s870_s9   ;;  %p1199_p7 = scmp.ne.s32.totalorder %s1193_s24, 0 }
 0x19f   : > { %p1200_p10 = scmp.ge.s32.totalorder %s890_s14, 2  ;;  %s548_s15 = scalar_lea.sflag [#allocation5], %s547_s5 }
 0x1a1   : > { %p682_p12 = pnand %p1200_p10, %p1199_p7 }
 0x1a3   : > { %865 = dma.done.wait (!%p682_p12), %s548_s15, 128  }
 0x1a4   : > { %867 = vsyncadd (!%p682_p12), %s548_s15, 4294967168  ;;  %s21_s14 = sadd.s32 1, %s890_s14   ;;  %s1201_s9 = smov %s874_s10 }
 0x1a5   : > { %p18_p9 = scmp.ge.s32.totalorder %s21_s14, 4   ;;  %s1202_s10 = smov %s878_s11 }
 0x1a6   : > { %s1203_s11 = smov %s972_s23  ;;  %s1204_s12 = smov %s886_s13 }
 0x1a7   : > { %s1205_s13 = smov %s1207_s17  ;;  %20 = sbr.rel (!%p18_p9) target bundleno = 8 (0x8), region = 94 }
 0x1ae   :  { %553 = vsyncpa [#allocation4], 1 }
 0x1af   :  { %555 = vsyncpa [#allocation4 + $0x1], 1 }
 0x1b0   :  { %556 = vsyncpa [#allocation7], 1 }
 0x1b1   :  { %558 = vsyncpa [#allocation7 + $0x1], 1 }
 0x1b2   :  { %559 = vsyncpa [#allocation5], 1 }
 0x1b3   :  { %561 = vsyncpa [#allocation5 + $0x1], 1 }

</bundles_post_ra>
